<compile_context>
chip_gen: v7x
topology: tpu7x:2x2x1
jax: 0.10.0
libtpu: 0.0.40
codegen_flags: <defaults>
</compile_context>

<pallas_src>
import functools

import jax
import jax.numpy as jnp
from jax.experimental import pallas as pl
from jax.experimental.pallas import tpu as pltpu


def _make_gru_rnn_kernel(hidden, input_padded, n_steps):
    """Kernel closure with static hidden size H, padded input width IP, steps N."""
    H = hidden
    IP = input_padded
    N = n_steps
    GB = 128                         # per-gate lane block width
    # Static row offsets inside the packed parameter slab.
    R_WHH = 0
    R_WIH = H
    R_CONST = H + IP
    R_WOUT = R_CONST + 8

    def sigm(v):                     # sigmoid as a single EUP tanh push + cheap VPU ops
        return 0.5 * (jnp.tanh(0.5 * v) + 1.0)

    def kernel(t0_ref, x0_ref, slab_ref, out_ref):
        # ---- loop-invariant preamble --------------------------------------
        wih = slab_ref[R_WIH:R_WIH + IP, :]                     # (IP, 3*GB)
        bih = slab_ref[R_CONST:R_CONST + 1, :]                  # (1, 3*GB), r/z hidden biases folded in
        gx = jnp.dot(x0_ref[...], wih,
                     preferred_element_type=jnp.float32) + bih  # (1, 3*GB)
        # 128-aligned block slices: pure vreg selection, no lane movement.
        c_r = gx[:, 0:GB]
        c_z = gx[:, GB:2 * GB]
        c_n = gx[:, 2 * GB:3 * GB]
        bhn = slab_ref[R_CONST + 1:R_CONST + 2, 2 * GB:3 * GB]  # (1, GB) n-gate hidden bias
        whh = slab_ref[R_WHH:R_WHH + H, :]                      # (H, 3*GB), vreg-resident

        # ---- step 1: analytic (h0 == 0 -> gh == 0), gated on t[0] > 0 -----
        r1 = sigm(c_r)
        z1 = sigm(c_z)
        n1 = jnp.tanh(c_n + r1 * bhn)
        h1 = ((1.0 - z1) * n1)[:, :H]                           # (1, H)
        h = jnp.where(t0_ref[0] > 0.0, h1, jnp.zeros_like(h1))

        # ---- steps 2..N: fully unrolled serial recurrence ------------------
        def gru_step(h):
            gh = jnp.dot(h, whh, preferred_element_type=jnp.float32)   # (1, 3*GB)
            r = sigm(c_r + gh[:, 0:GB])
            z = sigm(c_z + gh[:, GB:2 * GB])
            n = jnp.tanh(c_n + r * (gh[:, 2 * GB:3 * GB] + bhn))
            return n[:, :H] + z[:, :H] * (h - n[:, :H])         # == (1-z)*n + z*h

        for _ in range(N - 1):
            h = gru_step(h)

        # ---- head: out = Linear(relu(h)); lane-dense (1, 128) store --------
        wout = slab_ref[R_WOUT:R_WOUT + H, 0:GB]                # (H, GB)
        bout = slab_ref[R_CONST + 2:R_CONST + 3, 0:GB]          # (1, GB)
        out_ref[...] = jnp.dot(jnp.maximum(h, 0.0), wout,
                               preferred_element_type=jnp.float32) + bout

    return kernel


def prepare_params(params, input_size, hidden_size, output_size):
    """One-time prep: transpose, fold biases, give each gate its own 128-lane
    block, and pack everything into ONE f32 slab => a single HBM->VMEM DMA."""
    w_ih, w_hh, b_ih, b_hh, w_out, b_out = params
    H, I, O = hidden_size, input_size, output_size
    GB = 128
    if H % 8 != 0 or H > GB or O > GB:
        raise ValueError("need hidden_size % 8 == 0, hidden_size <= 128, output_size <= 128")
    IP = ((I + 7) // 8) * 8
    f32 = jnp.float32

    def per_gate_blocks(mat_t):   # (rows, 3H) -> (rows, 3*GB); each gate zero-padded to 128 lanes
        return jnp.concatenate(
            [jnp.pad(mat_t[:, g * H:(g + 1) * H], ((0, 0), (0, GB - H))) for g in range(3)],
            axis=1)

    whh_t = per_gate_blocks(jnp.transpose(w_hh).astype(f32))                   # (H, 3GB)
    wih_t = per_gate_blocks(jnp.transpose(w_ih).astype(f32))                   # (I, 3GB)
    wih_t = jnp.pad(wih_t, ((0, IP - I), (0, 0)))                              # (IP, 3GB)

    b_ih = b_ih.astype(f32)
    b_hh = b_hh.astype(f32)
    # Fold r/z hidden biases into the input bias (loop-invariant adds).
    bih_fold = b_ih + jnp.concatenate([b_hh[:2 * H], jnp.zeros((H,), f32)])
    bih_row = per_gate_blocks(bih_fold.reshape(1, 3 * H))                      # (1, 3GB)
    bhn_row = jnp.zeros((1, 3 * GB), f32).at[0, 2 * GB:2 * GB + H].set(b_hh[2 * H:])
    bout_row = jnp.zeros((1, 3 * GB), f32).at[0, :O].set(b_out.astype(f32))
    const_blk = jnp.concatenate(
        [bih_row, bhn_row, bout_row, jnp.zeros((5, 3 * GB), f32)], axis=0)     # (8, 3GB)

    wout_t = jnp.pad(jnp.transpose(w_out).astype(f32), ((0, 0), (0, GB - O)))  # (H, GB)
    wout_blk = jnp.pad(wout_t, ((0, 0), (0, 2 * GB)))                          # (H, 3GB)

    # Rows: [whh (H) | wih (IP) | consts (8) | wout (H)], width 3*128 lanes.
    return jnp.concatenate([whh_t, wih_t, const_blk, wout_blk], axis=0)


@functools.partial(jax.jit, static_argnames=("input_size", "hidden_size", "output_size"))
def gru_rnn_forward(t, x, slab, *, input_size, hidden_size, output_size):
    """Glue (slicing/padding only) in JAX; hot path is one Pallas invocation."""
    t = t.reshape(-1).astype(jnp.float32)
    N = t.shape[0]
    t0 = t[0:1]                                              # only t[0] drives control flow
    IP = ((input_size + 7) // 8) * 8
    x0 = x[0].reshape(1, -1).astype(jnp.float32)
    x0 = jnp.pad(x0, ((0, 0), (0, IP - input_size)))         # no-op when I already 8-aligned

    kernel = _make_gru_rnn_kernel(hidden_size, IP, N)
    vmem = pl.BlockSpec(memory_space=pltpu.MemorySpace.VMEM)
    smem = pl.BlockSpec(memory_space=pltpu.MemorySpace.SMEM)

    out = pl.pallas_call(
        kernel,
        out_shape=jax.ShapeDtypeStruct((1, 128), jnp.float32),   # lane-dense head
        in_specs=[smem, vmem, vmem],
        out_specs=vmem,
    )(t0, x0, slab)
    return out[:, :output_size]


def init_params(key, input_size, hidden_size, output_size):
    """Deterministic parameter init (uniform +/- 1/sqrt(H), PyTorch-style)."""
    ks = jax.random.split(key, 6)
    lim = 1.0 / jnp.sqrt(jnp.float32(hidden_size))
    w_ih = jax.random.uniform(ks[0], (3 * hidden_size, input_size),
                              jnp.float32, -lim, lim)
    w_hh = jax.random.uniform(ks[1], (3 * hidden_size, hidden_size),
                              jnp.float32, -lim, lim)
    b_ih = jax.random.uniform(ks[2], (3 * hidden_size,), jnp.float32, -lim, lim)
    b_hh = jax.random.uniform(ks[3], (3 * hidden_size,), jnp.float32, -lim, lim)
    w_out = jax.random.uniform(ks[4], (output_size, hidden_size),
                               jnp.float32, -lim, lim)
    b_out = jax.random.uniform(ks[5], (output_size,), jnp.float32, -lim, lim)
    return (w_ih, w_hh, b_ih, b_hh, w_out, b_out)


def reference_forward(t, x, params, hidden_size):
    """Pure-JAX reference mirroring the PyTorch semantics, for a sanity check."""
    w_ih, w_hh, b_ih, b_hh, w_out, b_out = params
    H = hidden_size
    t = t.reshape(-1).astype(jnp.float32)
    N = t.shape[0]
    x0 = x[0].reshape(1, -1).astype(jnp.float32)
    gx = x0 @ w_ih.T + b_ih

    def step(h):
        gh = h @ w_hh.T + b_hh
        r = jax.nn.sigmoid(gx[:, :H] + gh[:, :H])
        z = jax.nn.sigmoid(gx[:, H:2 * H] + gh[:, H:2 * H])
        n = jnp.tanh(gx[:, 2 * H:] + r * gh[:, 2 * H:])
        return (1.0 - z) * n + z * h

    h = jnp.zeros((1, H), jnp.float32)
    h = jnp.where(t[0] > 0.0, step(h), h)
    for _ in range(N - 1):
        h = step(h)
    return jnp.maximum(h, 0.0) @ w_out.T + b_out


if __name__ == "__main__":
    input_size, hidden_size, output_size, seq_len = 8, 32, 4, 8

    key = jax.random.PRNGKey(0)
    k_t, k_x, k_p = jax.random.split(key, 3)

    # t strictly increasing and positive => the "if t[0] > 0" branch is taken.
    t = jnp.linspace(0.1, 1.0, seq_len, dtype=jnp.float32)
    x = jax.random.normal(k_x, (seq_len, input_size), dtype=jnp.float32)
    params = init_params(k_p, input_size, hidden_size, output_size)

    # One-time parameter preparation (transpose / fold / pad / pack), off the call path.
    slab = jax.block_until_ready(
        prepare_params(params, input_size, hidden_size, output_size))

    out = gru_rnn_forward(t, x, slab, input_size=input_size,
                          hidden_size=hidden_size, output_size=output_size)
    out = jax.block_until_ready(out)

    ref = reference_forward(t, x, params, hidden_size)
    assert out.shape == (1, output_size)
    assert jnp.allclose(out, ref, atol=1e-5, rtol=1e-5), (out, ref)

    print("KERNEL_OK")
</pallas_src>

<mosaic_0001>
module attributes {stable_mosaic.version = 11 : i64} {
  func.func @kernel(%arg0: memref<1xf32, #tpu.memory_space<smem>>, %arg1: memref<1x8xf32, #tpu.memory_space<vmem>>, %arg2: memref<80x384xf32, #tpu.memory_space<vmem>>, %arg3: memref<1x128xf32, #tpu.memory_space<vmem>>) attributes {dimension_semantics = [], scalar_prefetch = 0 : i64, scratch_operands = 0 : i64, tpu.core_type = #tpu.core_type<tc>} {
    %c32 = arith.constant 32 : index
    %c0 = arith.constant 0 : index
    %0 = vector.load %arg2[%c32, %c0] : memref<80x384xf32, #tpu.memory_space<vmem>>, vector<8x384xf32>
    %c40 = arith.constant 40 : index
    %c0_0 = arith.constant 0 : index
    %1 = vector.load %arg2[%c40, %c0_0] : memref<80x384xf32, #tpu.memory_space<vmem>>, vector<1x384xf32>
    %c0_1 = arith.constant 0 : index
    %c0_2 = arith.constant 0 : index
    %2 = vector.load %arg1[%c0_1, %c0_2] : memref<1x8xf32, #tpu.memory_space<vmem>>, vector<1x8xf32>
    %cst = arith.constant dense<0.000000e+00> : vector<1x384xf32>
    %3 = tpu.matmul %2, %0, %cst {dimension_numbers = #tpu.dot_dimension_numbers<[1], [0], [0], [1], [0, 0, 1, 1], [], []>} : vector<1x8xf32>, vector<8x384xf32>, vector<1x384xf32> -> vector<1x384xf32>
    %4 = arith.addf %3, %1 : vector<1x384xf32>
    %5 = vector.extract_strided_slice %4 {offsets = [0, 0], sizes = [1, 128], strides = [1, 1]} : vector<1x384xf32> to vector<1x128xf32>
    %6 = vector.extract_strided_slice %4 {offsets = [0, 128], sizes = [1, 128], strides = [1, 1]} : vector<1x384xf32> to vector<1x128xf32>
    %7 = vector.extract_strided_slice %4 {offsets = [0, 256], sizes = [1, 128], strides = [1, 1]} : vector<1x384xf32> to vector<1x128xf32>
    %c41 = arith.constant 41 : index
    %c256 = arith.constant 256 : index
    %8 = vector.load %arg2[%c41, %c256] : memref<80x384xf32, #tpu.memory_space<vmem>>, vector<1x128xf32>
    %c0_3 = arith.constant 0 : index
    %c0_4 = arith.constant 0 : index
    %9 = vector.load %arg2[%c0_3, %c0_4] : memref<80x384xf32, #tpu.memory_space<vmem>>, vector<32x384xf32>
    %cst_5 = arith.constant 5.000000e-01 : f32
    %10 = vector.broadcast %cst_5 : f32 to vector<1x128xf32>
    %11 = arith.mulf %10, %5 : vector<1x128xf32>
    %12 = math.tanh %11 : vector<1x128xf32>
    %cst_6 = arith.constant 1.000000e+00 : f32
    %13 = vector.broadcast %cst_6 : f32 to vector<1x128xf32>
    %14 = arith.addf %12, %13 : vector<1x128xf32>
    %cst_7 = arith.constant 5.000000e-01 : f32
    %15 = vector.broadcast %cst_7 : f32 to vector<1x128xf32>
    %16 = arith.mulf %15, %14 : vector<1x128xf32>
    %cst_8 = arith.constant 5.000000e-01 : f32
    %17 = vector.broadcast %cst_8 : f32 to vector<1x128xf32>
    %18 = arith.mulf %17, %6 : vector<1x128xf32>
    %19 = math.tanh %18 : vector<1x128xf32>
    %cst_9 = arith.constant 1.000000e+00 : f32
    %20 = vector.broadcast %cst_9 : f32 to vector<1x128xf32>
    %21 = arith.addf %19, %20 : vector<1x128xf32>
    %cst_10 = arith.constant 5.000000e-01 : f32
    %22 = vector.broadcast %cst_10 : f32 to vector<1x128xf32>
    %23 = arith.mulf %22, %21 : vector<1x128xf32>
    %24 = arith.mulf %16, %8 : vector<1x128xf32>
    %25 = arith.addf %7, %24 : vector<1x128xf32>
    %26 = math.tanh %25 : vector<1x128xf32>
    %cst_11 = arith.constant 1.000000e+00 : f32
    %27 = vector.broadcast %cst_11 : f32 to vector<1x128xf32>
    %28 = arith.subf %27, %23 : vector<1x128xf32>
    %29 = arith.mulf %28, %26 : vector<1x128xf32>
    %30 = vector.extract_strided_slice %29 {offsets = [0, 0], sizes = [1, 32], strides = [1, 1]} : vector<1x128xf32> to vector<1x32xf32>
    %c0_12 = arith.constant 0 : index
    %31 = memref.load %arg0[%c0_12] : memref<1xf32, #tpu.memory_space<smem>>
    %cst_13 = arith.constant 0.000000e+00 : f32
    %32 = arith.cmpf ogt, %31, %cst_13 : f32
    %cst_14 = arith.constant 0.000000e+00 : f32
    %33 = vector.broadcast %cst_14 : f32 to vector<1x32xf32>
    %34 = arith.select %32, %30, %33 : vector<1x32xf32>
    %cst_15 = arith.constant dense<0.000000e+00> : vector<1x384xf32>
    %35 = tpu.matmul %34, %9, %cst_15 {dimension_numbers = #tpu.dot_dimension_numbers<[1], [0], [0], [1], [0, 0, 1, 1], [], []>} : vector<1x32xf32>, vector<32x384xf32>, vector<1x384xf32> -> vector<1x384xf32>
    %36 = vector.extract_strided_slice %35 {offsets = [0, 0], sizes = [1, 128], strides = [1, 1]} : vector<1x384xf32> to vector<1x128xf32>
    %37 = arith.addf %5, %36 : vector<1x128xf32>
    %cst_16 = arith.constant 5.000000e-01 : f32
    %38 = vector.broadcast %cst_16 : f32 to vector<1x128xf32>
    %39 = arith.mulf %38, %37 : vector<1x128xf32>
    %40 = math.tanh %39 : vector<1x128xf32>
    %cst_17 = arith.constant 1.000000e+00 : f32
    %41 = vector.broadcast %cst_17 : f32 to vector<1x128xf32>
    %42 = arith.addf %40, %41 : vector<1x128xf32>
    %cst_18 = arith.constant 5.000000e-01 : f32
    %43 = vector.broadcast %cst_18 : f32 to vector<1x128xf32>
    %44 = arith.mulf %43, %42 : vector<1x128xf32>
    %45 = vector.extract_strided_slice %35 {offsets = [0, 128], sizes = [1, 128], strides = [1, 1]} : vector<1x384xf32> to vector<1x128xf32>
    %46 = arith.addf %6, %45 : vector<1x128xf32>
    %cst_19 = arith.constant 5.000000e-01 : f32
    %47 = vector.broadcast %cst_19 : f32 to vector<1x128xf32>
    %48 = arith.mulf %47, %46 : vector<1x128xf32>
    %49 = math.tanh %48 : vector<1x128xf32>
    %cst_20 = arith.constant 1.000000e+00 : f32
    %50 = vector.broadcast %cst_20 : f32 to vector<1x128xf32>
    %51 = arith.addf %49, %50 : vector<1x128xf32>
    %cst_21 = arith.constant 5.000000e-01 : f32
    %52 = vector.broadcast %cst_21 : f32 to vector<1x128xf32>
    %53 = arith.mulf %52, %51 : vector<1x128xf32>
    %54 = vector.extract_strided_slice %35 {offsets = [0, 256], sizes = [1, 128], strides = [1, 1]} : vector<1x384xf32> to vector<1x128xf32>
    %55 = arith.addf %54, %8 : vector<1x128xf32>
    %56 = arith.mulf %44, %55 : vector<1x128xf32>
    %57 = arith.addf %7, %56 : vector<1x128xf32>
    %58 = math.tanh %57 : vector<1x128xf32>
    %59 = vector.extract_strided_slice %58 {offsets = [0, 0], sizes = [1, 32], strides = [1, 1]} : vector<1x128xf32> to vector<1x32xf32>
    %60 = vector.extract_strided_slice %53 {offsets = [0, 0], sizes = [1, 32], strides = [1, 1]} : vector<1x128xf32> to vector<1x32xf32>
    %61 = vector.extract_strided_slice %58 {offsets = [0, 0], sizes = [1, 32], strides = [1, 1]} : vector<1x128xf32> to vector<1x32xf32>
    %62 = arith.subf %34, %61 : vector<1x32xf32>
    %63 = arith.mulf %60, %62 : vector<1x32xf32>
    %64 = arith.addf %59, %63 : vector<1x32xf32>
    %cst_22 = arith.constant dense<0.000000e+00> : vector<1x384xf32>
    %65 = tpu.matmul %64, %9, %cst_22 {dimension_numbers = #tpu.dot_dimension_numbers<[1], [0], [0], [1], [0, 0, 1, 1], [], []>} : vector<1x32xf32>, vector<32x384xf32>, vector<1x384xf32> -> vector<1x384xf32>
    %66 = vector.extract_strided_slice %65 {offsets = [0, 0], sizes = [1, 128], strides = [1, 1]} : vector<1x384xf32> to vector<1x128xf32>
    %67 = arith.addf %5, %66 : vector<1x128xf32>
    %cst_23 = arith.constant 5.000000e-01 : f32
    %68 = vector.broadcast %cst_23 : f32 to vector<1x128xf32>
    %69 = arith.mulf %68, %67 : vector<1x128xf32>
    %70 = math.tanh %69 : vector<1x128xf32>
    %cst_24 = arith.constant 1.000000e+00 : f32
    %71 = vector.broadcast %cst_24 : f32 to vector<1x128xf32>
    %72 = arith.addf %70, %71 : vector<1x128xf32>
    %cst_25 = arith.constant 5.000000e-01 : f32
    %73 = vector.broadcast %cst_25 : f32 to vector<1x128xf32>
    %74 = arith.mulf %73, %72 : vector<1x128xf32>
    %75 = vector.extract_strided_slice %65 {offsets = [0, 128], sizes = [1, 128], strides = [1, 1]} : vector<1x384xf32> to vector<1x128xf32>
    %76 = arith.addf %6, %75 : vector<1x128xf32>
    %cst_26 = arith.constant 5.000000e-01 : f32
    %77 = vector.broadcast %cst_26 : f32 to vector<1x128xf32>
    %78 = arith.mulf %77, %76 : vector<1x128xf32>
    %79 = math.tanh %78 : vector<1x128xf32>
    %cst_27 = arith.constant 1.000000e+00 : f32
    %80 = vector.broadcast %cst_27 : f32 to vector<1x128xf32>
    %81 = arith.addf %79, %80 : vector<1x128xf32>
    %cst_28 = arith.constant 5.000000e-01 : f32
    %82 = vector.broadcast %cst_28 : f32 to vector<1x128xf32>
    %83 = arith.mulf %82, %81 : vector<1x128xf32>
    %84 = vector.extract_strided_slice %65 {offsets = [0, 256], sizes = [1, 128], strides = [1, 1]} : vector<1x384xf32> to vector<1x128xf32>
    %85 = arith.addf %84, %8 : vector<1x128xf32>
    %86 = arith.mulf %74, %85 : vector<1x128xf32>
    %87 = arith.addf %7, %86 : vector<1x128xf32>
    %88 = math.tanh %87 : vector<1x128xf32>
    %89 = vector.extract_strided_slice %88 {offsets = [0, 0], sizes = [1, 32], strides = [1, 1]} : vector<1x128xf32> to vector<1x32xf32>
    %90 = vector.extract_strided_slice %83 {offsets = [0, 0], sizes = [1, 32], strides = [1, 1]} : vector<1x128xf32> to vector<1x32xf32>
    %91 = vector.extract_strided_slice %88 {offsets = [0, 0], sizes = [1, 32], strides = [1, 1]} : vector<1x128xf32> to vector<1x32xf32>
    %92 = arith.subf %64, %91 : vector<1x32xf32>
    %93 = arith.mulf %90, %92 : vector<1x32xf32>
    %94 = arith.addf %89, %93 : vector<1x32xf32>
    %cst_29 = arith.constant dense<0.000000e+00> : vector<1x384xf32>
    %95 = tpu.matmul %94, %9, %cst_29 {dimension_numbers = #tpu.dot_dimension_numbers<[1], [0], [0], [1], [0, 0, 1, 1], [], []>} : vector<1x32xf32>, vector<32x384xf32>, vector<1x384xf32> -> vector<1x384xf32>
    %96 = vector.extract_strided_slice %95 {offsets = [0, 0], sizes = [1, 128], strides = [1, 1]} : vector<1x384xf32> to vector<1x128xf32>
    %97 = arith.addf %5, %96 : vector<1x128xf32>
    %cst_30 = arith.constant 5.000000e-01 : f32
    %98 = vector.broadcast %cst_30 : f32 to vector<1x128xf32>
    %99 = arith.mulf %98, %97 : vector<1x128xf32>
    %100 = math.tanh %99 : vector<1x128xf32>
    %cst_31 = arith.constant 1.000000e+00 : f32
    %101 = vector.broadcast %cst_31 : f32 to vector<1x128xf32>
    %102 = arith.addf %100, %101 : vector<1x128xf32>
    %cst_32 = arith.constant 5.000000e-01 : f32
    %103 = vector.broadcast %cst_32 : f32 to vector<1x128xf32>
    %104 = arith.mulf %103, %102 : vector<1x128xf32>
    %105 = vector.extract_strided_slice %95 {offsets = [0, 128], sizes = [1, 128], strides = [1, 1]} : vector<1x384xf32> to vector<1x128xf32>
    %106 = arith.addf %6, %105 : vector<1x128xf32>
    %cst_33 = arith.constant 5.000000e-01 : f32
    %107 = vector.broadcast %cst_33 : f32 to vector<1x128xf32>
    %108 = arith.mulf %107, %106 : vector<1x128xf32>
    %109 = math.tanh %108 : vector<1x128xf32>
    %cst_34 = arith.constant 1.000000e+00 : f32
    %110 = vector.broadcast %cst_34 : f32 to vector<1x128xf32>
    %111 = arith.addf %109, %110 : vector<1x128xf32>
    %cst_35 = arith.constant 5.000000e-01 : f32
    %112 = vector.broadcast %cst_35 : f32 to vector<1x128xf32>
    %113 = arith.mulf %112, %111 : vector<1x128xf32>
    %114 = vector.extract_strided_slice %95 {offsets = [0, 256], sizes = [1, 128], strides = [1, 1]} : vector<1x384xf32> to vector<1x128xf32>
    %115 = arith.addf %114, %8 : vector<1x128xf32>
    %116 = arith.mulf %104, %115 : vector<1x128xf32>
    %117 = arith.addf %7, %116 : vector<1x128xf32>
    %118 = math.tanh %117 : vector<1x128xf32>
    %119 = vector.extract_strided_slice %118 {offsets = [0, 0], sizes = [1, 32], strides = [1, 1]} : vector<1x128xf32> to vector<1x32xf32>
    %120 = vector.extract_strided_slice %113 {offsets = [0, 0], sizes = [1, 32], strides = [1, 1]} : vector<1x128xf32> to vector<1x32xf32>
    %121 = vector.extract_strided_slice %118 {offsets = [0, 0], sizes = [1, 32], strides = [1, 1]} : vector<1x128xf32> to vector<1x32xf32>
    %122 = arith.subf %94, %121 : vector<1x32xf32>
    %123 = arith.mulf %120, %122 : vector<1x32xf32>
    %124 = arith.addf %119, %123 : vector<1x32xf32>
    %cst_36 = arith.constant dense<0.000000e+00> : vector<1x384xf32>
    %125 = tpu.matmul %124, %9, %cst_36 {dimension_numbers = #tpu.dot_dimension_numbers<[1], [0], [0], [1], [0, 0, 1, 1], [], []>} : vector<1x32xf32>, vector<32x384xf32>, vector<1x384xf32> -> vector<1x384xf32>
    %126 = vector.extract_strided_slice %125 {offsets = [0, 0], sizes = [1, 128], strides = [1, 1]} : vector<1x384xf32> to vector<1x128xf32>
    %127 = arith.addf %5, %126 : vector<1x128xf32>
    %cst_37 = arith.constant 5.000000e-01 : f32
    %128 = vector.broadcast %cst_37 : f32 to vector<1x128xf32>
    %129 = arith.mulf %128, %127 : vector<1x128xf32>
    %130 = math.tanh %129 : vector<1x128xf32>
    %cst_38 = arith.constant 1.000000e+00 : f32
    %131 = vector.broadcast %cst_38 : f32 to vector<1x128xf32>
    %132 = arith.addf %130, %131 : vector<1x128xf32>
    %cst_39 = arith.constant 5.000000e-01 : f32
    %133 = vector.broadcast %cst_39 : f32 to vector<1x128xf32>
    %134 = arith.mulf %133, %132 : vector<1x128xf32>
    %135 = vector.extract_strided_slice %125 {offsets = [0, 128], sizes = [1, 128], strides = [1, 1]} : vector<1x384xf32> to vector<1x128xf32>
    %136 = arith.addf %6, %135 : vector<1x128xf32>
    %cst_40 = arith.constant 5.000000e-01 : f32
    %137 = vector.broadcast %cst_40 : f32 to vector<1x128xf32>
    %138 = arith.mulf %137, %136 : vector<1x128xf32>
    %139 = math.tanh %138 : vector<1x128xf32>
    %cst_41 = arith.constant 1.000000e+00 : f32
    %140 = vector.broadcast %cst_41 : f32 to vector<1x128xf32>
    %141 = arith.addf %139, %140 : vector<1x128xf32>
    %cst_42 = arith.constant 5.000000e-01 : f32
    %142 = vector.broadcast %cst_42 : f32 to vector<1x128xf32>
    %143 = arith.mulf %142, %141 : vector<1x128xf32>
    %144 = vector.extract_strided_slice %125 {offsets = [0, 256], sizes = [1, 128], strides = [1, 1]} : vector<1x384xf32> to vector<1x128xf32>
    %145 = arith.addf %144, %8 : vector<1x128xf32>
    %146 = arith.mulf %134, %145 : vector<1x128xf32>
    %147 = arith.addf %7, %146 : vector<1x128xf32>
    %148 = math.tanh %147 : vector<1x128xf32>
    %149 = vector.extract_strided_slice %148 {offsets = [0, 0], sizes = [1, 32], strides = [1, 1]} : vector<1x128xf32> to vector<1x32xf32>
    %150 = vector.extract_strided_slice %143 {offsets = [0, 0], sizes = [1, 32], strides = [1, 1]} : vector<1x128xf32> to vector<1x32xf32>
    %151 = vector.extract_strided_slice %148 {offsets = [0, 0], sizes = [1, 32], strides = [1, 1]} : vector<1x128xf32> to vector<1x32xf32>
    %152 = arith.subf %124, %151 : vector<1x32xf32>
    %153 = arith.mulf %150, %152 : vector<1x32xf32>
    %154 = arith.addf %149, %153 : vector<1x32xf32>
    %cst_43 = arith.constant dense<0.000000e+00> : vector<1x384xf32>
    %155 = tpu.matmul %154, %9, %cst_43 {dimension_numbers = #tpu.dot_dimension_numbers<[1], [0], [0], [1], [0, 0, 1, 1], [], []>} : vector<1x32xf32>, vector<32x384xf32>, vector<1x384xf32> -> vector<1x384xf32>
    %156 = vector.extract_strided_slice %155 {offsets = [0, 0], sizes = [1, 128], strides = [1, 1]} : vector<1x384xf32> to vector<1x128xf32>
    %157 = arith.addf %5, %156 : vector<1x128xf32>
    %cst_44 = arith.constant 5.000000e-01 : f32
    %158 = vector.broadcast %cst_44 : f32 to vector<1x128xf32>
    %159 = arith.mulf %158, %157 : vector<1x128xf32>
    %160 = math.tanh %159 : vector<1x128xf32>
    %cst_45 = arith.constant 1.000000e+00 : f32
    %161 = vector.broadcast %cst_45 : f32 to vector<1x128xf32>
    %162 = arith.addf %160, %161 : vector<1x128xf32>
    %cst_46 = arith.constant 5.000000e-01 : f32
    %163 = vector.broadcast %cst_46 : f32 to vector<1x128xf32>
    %164 = arith.mulf %163, %162 : vector<1x128xf32>
    %165 = vector.extract_strided_slice %155 {offsets = [0, 128], sizes = [1, 128], strides = [1, 1]} : vector<1x384xf32> to vector<1x128xf32>
    %166 = arith.addf %6, %165 : vector<1x128xf32>
    %cst_47 = arith.constant 5.000000e-01 : f32
    %167 = vector.broadcast %cst_47 : f32 to vector<1x128xf32>
    %168 = arith.mulf %167, %166 : vector<1x128xf32>
    %169 = math.tanh %168 : vector<1x128xf32>
    %cst_48 = arith.constant 1.000000e+00 : f32
    %170 = vector.broadcast %cst_48 : f32 to vector<1x128xf32>
    %171 = arith.addf %169, %170 : vector<1x128xf32>
    %cst_49 = arith.constant 5.000000e-01 : f32
    %172 = vector.broadcast %cst_49 : f32 to vector<1x128xf32>
    %173 = arith.mulf %172, %171 : vector<1x128xf32>
    %174 = vector.extract_strided_slice %155 {offsets = [0, 256], sizes = [1, 128], strides = [1, 1]} : vector<1x384xf32> to vector<1x128xf32>
    %175 = arith.addf %174, %8 : vector<1x128xf32>
    %176 = arith.mulf %164, %175 : vector<1x128xf32>
    %177 = arith.addf %7, %176 : vector<1x128xf32>
    %178 = math.tanh %177 : vector<1x128xf32>
    %179 = vector.extract_strided_slice %178 {offsets = [0, 0], sizes = [1, 32], strides = [1, 1]} : vector<1x128xf32> to vector<1x32xf32>
    %180 = vector.extract_strided_slice %173 {offsets = [0, 0], sizes = [1, 32], strides = [1, 1]} : vector<1x128xf32> to vector<1x32xf32>
    %181 = vector.extract_strided_slice %178 {offsets = [0, 0], sizes = [1, 32], strides = [1, 1]} : vector<1x128xf32> to vector<1x32xf32>
    %182 = arith.subf %154, %181 : vector<1x32xf32>
    %183 = arith.mulf %180, %182 : vector<1x32xf32>
    %184 = arith.addf %179, %183 : vector<1x32xf32>
    %cst_50 = arith.constant dense<0.000000e+00> : vector<1x384xf32>
    %185 = tpu.matmul %184, %9, %cst_50 {dimension_numbers = #tpu.dot_dimension_numbers<[1], [0], [0], [1], [0, 0, 1, 1], [], []>} : vector<1x32xf32>, vector<32x384xf32>, vector<1x384xf32> -> vector<1x384xf32>
    %186 = vector.extract_strided_slice %185 {offsets = [0, 0], sizes = [1, 128], strides = [1, 1]} : vector<1x384xf32> to vector<1x128xf32>
    %187 = arith.addf %5, %186 : vector<1x128xf32>
    %cst_51 = arith.constant 5.000000e-01 : f32
    %188 = vector.broadcast %cst_51 : f32 to vector<1x128xf32>
    %189 = arith.mulf %188, %187 : vector<1x128xf32>
    %190 = math.tanh %189 : vector<1x128xf32>
    %cst_52 = arith.constant 1.000000e+00 : f32
    %191 = vector.broadcast %cst_52 : f32 to vector<1x128xf32>
    %192 = arith.addf %190, %191 : vector<1x128xf32>
    %cst_53 = arith.constant 5.000000e-01 : f32
    %193 = vector.broadcast %cst_53 : f32 to vector<1x128xf32>
    %194 = arith.mulf %193, %192 : vector<1x128xf32>
    %195 = vector.extract_strided_slice %185 {offsets = [0, 128], sizes = [1, 128], strides = [1, 1]} : vector<1x384xf32> to vector<1x128xf32>
    %196 = arith.addf %6, %195 : vector<1x128xf32>
    %cst_54 = arith.constant 5.000000e-01 : f32
    %197 = vector.broadcast %cst_54 : f32 to vector<1x128xf32>
    %198 = arith.mulf %197, %196 : vector<1x128xf32>
    %199 = math.tanh %198 : vector<1x128xf32>
    %cst_55 = arith.constant 1.000000e+00 : f32
    %200 = vector.broadcast %cst_55 : f32 to vector<1x128xf32>
    %201 = arith.addf %199, %200 : vector<1x128xf32>
    %cst_56 = arith.constant 5.000000e-01 : f32
    %202 = vector.broadcast %cst_56 : f32 to vector<1x128xf32>
    %203 = arith.mulf %202, %201 : vector<1x128xf32>
    %204 = vector.extract_strided_slice %185 {offsets = [0, 256], sizes = [1, 128], strides = [1, 1]} : vector<1x384xf32> to vector<1x128xf32>
    %205 = arith.addf %204, %8 : vector<1x128xf32>
    %206 = arith.mulf %194, %205 : vector<1x128xf32>
    %207 = arith.addf %7, %206 : vector<1x128xf32>
    %208 = math.tanh %207 : vector<1x128xf32>
    %209 = vector.extract_strided_slice %208 {offsets = [0, 0], sizes = [1, 32], strides = [1, 1]} : vector<1x128xf32> to vector<1x32xf32>
    %210 = vector.extract_strided_slice %203 {offsets = [0, 0], sizes = [1, 32], strides = [1, 1]} : vector<1x128xf32> to vector<1x32xf32>
    %211 = vector.extract_strided_slice %208 {offsets = [0, 0], sizes = [1, 32], strides = [1, 1]} : vector<1x128xf32> to vector<1x32xf32>
    %212 = arith.subf %184, %211 : vector<1x32xf32>
    %213 = arith.mulf %210, %212 : vector<1x32xf32>
    %214 = arith.addf %209, %213 : vector<1x32xf32>
    %cst_57 = arith.constant dense<0.000000e+00> : vector<1x384xf32>
    %215 = tpu.matmul %214, %9, %cst_57 {dimension_numbers = #tpu.dot_dimension_numbers<[1], [0], [0], [1], [0, 0, 1, 1], [], []>} : vector<1x32xf32>, vector<32x384xf32>, vector<1x384xf32> -> vector<1x384xf32>
    %216 = vector.extract_strided_slice %215 {offsets = [0, 0], sizes = [1, 128], strides = [1, 1]} : vector<1x384xf32> to vector<1x128xf32>
    %217 = arith.addf %5, %216 : vector<1x128xf32>
    %cst_58 = arith.constant 5.000000e-01 : f32
    %218 = vector.broadcast %cst_58 : f32 to vector<1x128xf32>
    %219 = arith.mulf %218, %217 : vector<1x128xf32>
    %220 = math.tanh %219 : vector<1x128xf32>
    %cst_59 = arith.constant 1.000000e+00 : f32
    %221 = vector.broadcast %cst_59 : f32 to vector<1x128xf32>
    %222 = arith.addf %220, %221 : vector<1x128xf32>
    %cst_60 = arith.constant 5.000000e-01 : f32
    %223 = vector.broadcast %cst_60 : f32 to vector<1x128xf32>
    %224 = arith.mulf %223, %222 : vector<1x128xf32>
    %225 = vector.extract_strided_slice %215 {offsets = [0, 128], sizes = [1, 128], strides = [1, 1]} : vector<1x384xf32> to vector<1x128xf32>
    %226 = arith.addf %6, %225 : vector<1x128xf32>
    %cst_61 = arith.constant 5.000000e-01 : f32
    %227 = vector.broadcast %cst_61 : f32 to vector<1x128xf32>
    %228 = arith.mulf %227, %226 : vector<1x128xf32>
    %229 = math.tanh %228 : vector<1x128xf32>
    %cst_62 = arith.constant 1.000000e+00 : f32
    %230 = vector.broadcast %cst_62 : f32 to vector<1x128xf32>
    %231 = arith.addf %229, %230 : vector<1x128xf32>
    %cst_63 = arith.constant 5.000000e-01 : f32
    %232 = vector.broadcast %cst_63 : f32 to vector<1x128xf32>
    %233 = arith.mulf %232, %231 : vector<1x128xf32>
    %234 = vector.extract_strided_slice %215 {offsets = [0, 256], sizes = [1, 128], strides = [1, 1]} : vector<1x384xf32> to vector<1x128xf32>
    %235 = arith.addf %234, %8 : vector<1x128xf32>
    %236 = arith.mulf %224, %235 : vector<1x128xf32>
    %237 = arith.addf %7, %236 : vector<1x128xf32>
    %238 = math.tanh %237 : vector<1x128xf32>
    %239 = vector.extract_strided_slice %238 {offsets = [0, 0], sizes = [1, 32], strides = [1, 1]} : vector<1x128xf32> to vector<1x32xf32>
    %240 = vector.extract_strided_slice %233 {offsets = [0, 0], sizes = [1, 32], strides = [1, 1]} : vector<1x128xf32> to vector<1x32xf32>
    %241 = vector.extract_strided_slice %238 {offsets = [0, 0], sizes = [1, 32], strides = [1, 1]} : vector<1x128xf32> to vector<1x32xf32>
    %242 = arith.subf %214, %241 : vector<1x32xf32>
    %243 = arith.mulf %240, %242 : vector<1x32xf32>
    %244 = arith.addf %239, %243 : vector<1x32xf32>
    %c48 = arith.constant 48 : index
    %c0_64 = arith.constant 0 : index
    %245 = vector.load %arg2[%c48, %c0_64] : memref<80x384xf32, #tpu.memory_space<vmem>>, vector<32x128xf32>
    %c42 = arith.constant 42 : index
    %c0_65 = arith.constant 0 : index
    %246 = vector.load %arg2[%c42, %c0_65] : memref<80x384xf32, #tpu.memory_space<vmem>>, vector<1x128xf32>
    %cst_66 = arith.constant 0.000000e+00 : f32
    %247 = vector.broadcast %cst_66 : f32 to vector<1x32xf32>
    %248 = arith.maximumf %244, %247 : vector<1x32xf32>
    %cst_67 = arith.constant dense<0.000000e+00> : vector<1x128xf32>
    %249 = tpu.matmul %248, %245, %cst_67 {dimension_numbers = #tpu.dot_dimension_numbers<[1], [0], [0], [1], [0, 0, 1, 1], [], []>} : vector<1x32xf32>, vector<32x128xf32>, vector<1x128xf32> -> vector<1x128xf32>
    %250 = arith.addf %249, %246 : vector<1x128xf32>
    %c0_68 = arith.constant 0 : index
    %c0_69 = arith.constant 0 : index
    %251 = vector.load %arg3[%c0_68, %c0_69] : memref<1x128xf32, #tpu.memory_space<vmem>>, vector<1x128xf32>
    tpu.vector_store %arg3[%c0_68, %c0_69], %250 {strides = array<i32>} : memref<1x128xf32, #tpu.memory_space<vmem>>, vector<1x128xf32>,
    return
  }
}

</mosaic_0001>

<bundles_post_ra>
// kernel: gru_rnn_forward.1
= control target key start
LH: loop header
LB: loop body
LE: loop exit
PB: predicated region body
PF: predicated region fallthrough
CT: control target
= control target key end

     0   :  { %9 = vsyncpa [#allocation4], 0  ;;  %s2020_s0 = inlined_call_operand.<no memory space> [shape: f32[1], index: 0, kind: input, shape index: {}]   ;;  %s2021_s1 = inlined_call_operand.vmem [shape: f32[1,8], index: 1, kind: input, shape index: {}]   ;;  %s2022_s2 = inlined_call_operand.hbm [shape: f32[80,384], index: 2, kind: input, shape index: {}]   ;;  %s2023_s3 = inlined_call_operand.hbm [shape: f32[1,128], index: 3, kind: output, shape index: {}]  }
   0x1   :  { %10 = vsyncpa [#allocation5], 0  ;;  %s1811_s12 = smov [#allocation3]   ;;  %s1763_s16 = scalar_lea.hbm %s2022_s2, 3840 }
   0x2   :  { %s20_s13 = sshll.u32 %s1811_s12, 4  ;;  %p1764_p0 = scmp.ne.s32.totalorder %s2022_s2, %s1763_s16  ;;  %s21_s13 = int_to_ptr.vmem [resolvable:$true] %s20_s13 }
   0x3   :  { %p1767_p1 = scmp.lt.u32.totalorder %s1763_s16, %s2022_s2 }
   0x5   :  { %p1769_p2 = pnand %p1767_p1, %p1764_p0 }
   0x7   :  { %1772 = shalt.err (!%p1769_p2)
}
   0x8   :  { %s1773_s21 = scalar_lea.vmem %s21_s13, 3840  ;;  %p1778_p4 = scmp.lt.s32.totalorder %s21_s13, %s21_s13 }
   0x9   :  { %p1774_p3 = scmp.ne.s32.totalorder %s21_s13, %s1773_s21  ;;  %p1779_p5 = scmp.lt.s32.totalorder %s1773_s21, %s1773_s21 }
   0xb   :  { %p1780_p6 = por %p1779_p5, %p1778_p4 }
   0xd   :  { %p1781_p7 = pnand %p1780_p6, %p1774_p3 }
   0xf   :  { %1784 = shalt.err (!%p1781_p7)
}
  0x10   :  { %s1812_s22 = smov 384   ;;  %s1813_s23 = smov 24  }
  0x11   :  { %26 = dma.hbm_to_vmem [thread:$0]  %s2022_s2, 3840, %s21_s13, [#allocation4], %s1812_s22, %s1812_s22, %s1813_s23  }
  0x12   :  { %1807 = dma.done.wait [#allocation4], 3840  }
  0x13   :  { %1808 = vsyncadd [#allocation4], 4294963456  ;;  %v1814_v0 = vmov 0.0   ;;  %v31_v1 = vld [vmem:[#allocation3 + $0x68] sm:$0xff]  ;;  %v30_v2 = vld [vmem:[#allocation3 + $0x60] sm:$0xff]  ;;  %vm52_vm0 = vcmask 64512   ;;  %v37_v24 = vlaneseq }
  0x14   :  { %120 = vmatprep.mubr.f32.mxu1 %v1814_v0  ;;  %297 = vmatprep.mubr.f32.mxu0 %v1814_v0  ;;  %v35_v3 = vld [vmem:[%s2021_s1] sm:$0x1]  ;;  %v32_v4 = vld [vmem:[#allocation3 + $0x70] sm:$0xff]  ;;  %vm1815_vm1 = vmmov 0   ;;  %v199_v5 = vld [vmem:[#allocation3 + $0x8] sm:$0xff]  ;;  %v1816_v9 = vmov 0.0|0.0  }
  0x15   :  { %56 = vmatprep.subr.mxu1 %v31_v1  ;;  %v202_v6 = vld [vmem:[#allocation3 + $0x20] sm:$0xff]  ;;  %v201_v10 = vld [vmem:[#allocation3 + $0x18] sm:$0xff]  ;;  %v200_v11 = vld [vmem:[#allocation3 + $0x10] sm:$0xff]  ;;  %v38_v25 = vshrl.u32 %v37_v24, 7  ;;  %p224_p8 = scmp.gt.f32.partialorder %s2020_s0, 0.0  ;;  %vm229_vm3 = vcmask 261120  }
  0x16   :  { %57 = vmatpush1.msra.mxu1 %v30_v2  ;;  %v198_v7 = vld [vmem:[#allocation3] sm:$0xff]  ;;  %v1860_v8 = vpack.c.bf16 %v202_v6, %v199_v5  ;;  %v203_v12 = vld [vmem:[#allocation3 + $0x28] sm:$0xff]  ;;  %v205_v15 = vld [vmem:[#allocation3 + $0x38] sm:$0xff]  ;;  %s1817_s0 = smov [#allocation6]  }
  0x17   :  { %1452 = vmatmul.mubr.msk.f32.vlgmr.msra.gmra.mrb[0].mxu1 %vm52_vm0, %v35_v3  ;;  %1511 = vmatprep.subr.mxu1 %v1814_v0  ;;  %v1863_v13 = vpack.c.bf16 %v201_v10, %v198_v7  ;;  %v1865_v14 = vpack.c.bf16 %v203_v12, %v200_v11  ;;  %v208_v16 = vld [vmem:[#allocation3 + $0x50] sm:$0xff]  ;;  %v207_v19 = vld [vmem:[#allocation3 + $0x48] sm:$0xff]  ;;  %v206_v20 = vld [vmem:[#allocation3 + $0x40] sm:$0xff]  ;;  %v39_v26 = vsub.s32 0, %v38_v25  ;;  %v43_v28 = vsub.s32 1, %v38_v25  ;;  %s1443_s29 = sshll.u32 %s1817_s0, 4  ;;  %s1444_s29 = int_to_ptr.vmem [resolvable:$true] %s1443_s29 }
  0x18   :  { %1512 = vmatpush3.msra.mxu1 %v32_v4  ;;  %1513 = vmatprep.mubr.msk.f32.mxu1 %vm1815_vm1, %v1814_v0  ;;  %v204_v17 = vld [vmem:[#allocation3 + $0x30] sm:$0xff]  ;;  %v1868_v18 = vpack.c.bf16 %v208_v16, %v205_v15  ;;  %v209_v21 = vld [vmem:[#allocation3 + $0x58] sm:$0xff]  ;;  %v47_v39 = vsub.s32 2, %v38_v25  ;;  %v1888_v43 = vld [vmem:[#allocation3 + $0x89] ss:$0 sm:$0xff]  ;;  %s1785_s30 = scalar_lea.vmem %s1444_s29, 16  ;;  %p1790_p10 = scmp.lt.s32.totalorder %s1444_s29, %s1444_s29 }
  0x19   :  { %1612 = vmatprep.subr.bf16.mxu1 %v1816_v9  ;;  %1605 = vmatprep.subr.bf16.mxu0 %v1860_v8  ;;  %v1872_v22 = vpack.c.bf16 %v207_v19, %v204_v17  ;;  %v1874_v23 = vpack.c.bf16 %v209_v21, %v206_v20  ;;  %v34_v27 = vld [vmem:[#allocation3 + $0x78] ss:$8 sm:$0x7]  ;;  %s225_s28 = scalar_select %p224_p8, 1, 0 }
  0x1a   :  { %1607 = vmatpush1.bf16.msra.mxu0 %v1863_v13  ;;  %v40_v29 = vrot.slane %v34_v27, %v39_v26  ;;  %v44_v31 = vrot.slane %v34_v27, %v43_v28  ;;  %v48_v40 = vrot.slane %v34_v27, %v47_v39  ;;  %p1786_p9 = scmp.ne.s32.totalorder %s1444_s29, %s1785_s30  ;;  %s1789_s4 = scalar_lea.vmem %s1444_s29, 32 }
  0x1b   :  { %1514 = vmatmul.mubr.msk.f32.vlgmr.msra.gmra.mrb[2].mxu1 %vm52_vm0, %v35_v3  ;;  %1609 = vmatprep.subr.bf16.mxu0 %v1868_v18  ;;  %v226_v51 = vstv %s225_s28  ;;  %p1791_p11 = scmp.lt.s32.totalorder %s1789_s4, %s1785_s30 }
  0x1c   :  { %1524 = vmatprep.mubr.msk.f32.mxu1 %vm1815_vm1, %v1814_v0  ;;  %1614 = vmatpush3.bf16.msra.mxu1 %v1865_v14  ;;  %vm227_vm2 = vcmp.eq.s32.totalorder %v226_v51, 1 }
  0x1d   :  { %1615 = vmatprep.subr.bf16.mxu1 %v1816_v9  ;;  %p1792_p12 = por %p1791_p11, %p1790_p10 }
  0x1e   :  { %1611 = vmatpush1.bf16.msra.mxu0 %v1872_v22 }
  0x1f   :  { %1619 = vmatprep.subr.bf16.mxu0 %v1860_v8  ;;  %p1793_p13 = pnand %p1792_p12, %p1786_p9 }
  0x20   :  { %1617 = vmatpush3.bf16.msra.mxu1 %v1874_v23 }
  0x21   :  { %1626 = vmatprep.subr.bf16.mxu1 %v1816_v9 }
  0xea   :  { %v122_v30 = vpop.f32.mrb[0].mxu1 }
  0xeb   :  { %v1882_v32 = vadd.f32 %v122_v30, %v40_v29  ;;  %v124_v33 = vpop.f32.mrb[1].mxu1 }
  0xec   :  { %v1885_v35 = vadd.f32 %v124_v33, %v44_v31 }
  0xed   :  { %v210_v34 = vmul.f32 0.5, %v1882_v32 }
  0xee   :  { %v193_v36 = vpop.f32.mrb[2].mxu1  ;;  %v214_v38 = vmul.f32 0.5, %v1885_v35 }
  0xef   :  { %v1515_v37 = vpop.f32.mrb[3].mxu1  ;;  %1715 = vtanh.f32 %v210_v34  ;;  %v1890_v44 = vadd.f32 %v193_v36, %v48_v40 }
  0xf0   :  { %1717 = vtanh.f32 %v214_v38 }
  0xf9   :  { %v1716_v41 = vpop.eup %1715 }
  0xfa   :  { %v212_v42 = vadd.f32 1.0, %v1716_v41  ;;  %v1718_v47 = vpop.eup %1717 }
  0xfb   :  { %v216_v49 = vadd.f32 1.0, %v1718_v47 }
  0xfc   :  { %v213_v45 = vmul.f32 0.5, %v212_v42 }
  0xfd   :  { %v217_v50 = vmul.f32 0.5, %v216_v49 }
  0xfe   :  { %v218_v46 = vmul.f32 %v213_v45, %v1888_v43 }
  0xff   :  { %v221_v52 = vsub.f32 1.0, %v217_v50 }
 0x100   :  { %v219_v48 = vadd.f32 %v218_v46, %v1890_v44 }
 0x102   :  { %1719 = vtanh.f32 %v219_v48 }
 0x10c   :  { %v1720_v53 = vpop.eup %1719 }
 0x10d   :  { %v222_v54 = vmul.f32 %v1720_v53, %v221_v52 }
 0x10f   :  { %v228_v55 = vsel %vm227_vm2, %v222_v54, 0.0 }
 0x110   :  { %1454 = vmatmul.mubr.msk.f32.vlgmr.msra.gmra.mrb[0].mxu0 %vm229_vm3, %v228_v55  ;;  %1525 = vmatmul.mubr.msk.f32.vlgmr.msra.gmra.mrb[4].mxu1 %vm229_vm3, %v228_v55 }
 0x111   :  { %1621 = vmatpush1.bf16.msra.mxu0 %v1863_v13  ;;  %1628 = vmatpush3.bf16.msra.mxu1 %v1865_v14 }
 0x112   :  { %1623 = vmatprep.subr.bf16.mxu0 %v1868_v18  ;;  %1629 = vmatprep.subr.bf16.mxu1 %v1816_v9 }
 0x113   :  { %458 = vmatprep.mubr.f32.mxu0 %v1814_v0  ;;  %1535 = vmatprep.mubr.msk.f32.mxu1 %vm1815_vm1, %v1814_v0 }
 0x115   :  { %1625 = vmatpush1.bf16.msra.mxu0 %v1872_v22  ;;  %1631 = vmatpush3.bf16.msra.mxu1 %v1874_v23 }
 0x116   :  { %1633 = vmatprep.subr.bf16.mxu0 %v1860_v8  ;;  %1640 = vmatprep.subr.bf16.mxu1 %v1816_v9 }
 0x1e3   :  { %v299_v56 = vpop.f32.mrb[0].mxu0  ;;  %v370_v57 = vpop.f32.mrb[4].mxu1 }
 0x1e4   :  { %v374_v58 = vadd.f32 %v299_v56, %v1882_v32  ;;  %v301_v59 = vpop.f32.mrb[1].mxu0  ;;  %v1526_v60 = vpop.f32.mrb[5].mxu1  ;;  %v384_v4 = vadd.f32 %v370_v57, %v1888_v43 }
 0x1e5   :  { %v379_v62 = vadd.f32 %v301_v59, %v1885_v35 }
 0x1e6   :  { %v375_v61 = vmul.f32 0.5, %v374_v58 }
 0x1e7   :  { %v380_v63 = vmul.f32 0.5, %v379_v62 }
 0x1e8   :  { %1721 = vtanh.f32 %v375_v61 }
 0x1e9   :  { %1723 = vtanh.f32 %v380_v63 }
 0x1f2   :  { %v1722_v1 = vpop.eup %1721 }
 0x1f3   :  { %v377_v2 = vadd.f32 1.0, %v1722_v1  ;;  %v1724_v7 = vpop.eup %1723 }
 0x1f4   :  { %v382_v10 = vadd.f32 1.0, %v1724_v7 }
 0x1f5   :  { %v378_v3 = vmul.f32 0.5, %v377_v2 }
 0x1f6   :  { %v383_v12 = vmul.f32 0.5, %v382_v10 }
 0x1f7   :  { %v385_v5 = vmul.f32 %v384_v4, %v378_v3 }
 0x1f9   :  { %v386_v6 = vadd.f32 %v385_v5, %v1890_v44 }
 0x1fb   :  { %1725 = vtanh.f32 %v386_v6 }
 0x205   :  { %v1726_v11 = vpop.eup %1725 }
 0x206   :  { %v388_v15 = vsub.f32 %v228_v55, %v1726_v11 }
 0x208   :  { %v389_v16 = vmul.f32 %v388_v15, %v383_v12 }
 0x20a   :  { %v390_v17 = vadd.f32 %v1726_v11, %v389_v16 }
 0x20c   :  { %1456 = vmatmul.mubr.msk.f32.vlgmr.msra.gmra.mrb[2].mxu0 %vm229_vm3, %v390_v17  ;;  %1536 = vmatmul.mubr.msk.f32.vlgmr.msra.gmra.mrb[6].mxu1 %vm229_vm3, %v390_v17 }
 0x20d   :  { %1635 = vmatpush1.bf16.msra.mxu0 %v1863_v13  ;;  %1642 = vmatpush3.bf16.msra.mxu1 %v1865_v14 }
 0x20e   :  { %1637 = vmatprep.subr.bf16.mxu0 %v1868_v18  ;;  %1643 = vmatprep.subr.bf16.mxu1 %v1816_v9 }
 0x20f   :  { %619 = vmatprep.mubr.f32.mxu0 %v1814_v0  ;;  %1546 = vmatprep.mubr.msk.f32.mxu1 %vm1815_vm1, %v1814_v0 }
 0x211   :  { %1639 = vmatpush1.bf16.msra.mxu0 %v1872_v22  ;;  %1645 = vmatpush3.bf16.msra.mxu1 %v1874_v23 }
 0x212   :  { %1647 = vmatprep.subr.bf16.mxu0 %v1860_v8  ;;  %1654 = vmatprep.subr.bf16.mxu1 %v1816_v9 }
 0x2df   :  { %v460_v19 = vpop.f32.mrb[2].mxu0  ;;  %v531_v20 = vpop.f32.mrb[6].mxu1 }
 0x2e0   :  { %v535_v21 = vadd.f32 %v460_v19, %v1882_v32  ;;  %v462_v24 = vpop.f32.mrb[3].mxu0  ;;  %v1537_v25 = vpop.f32.mrb[7].mxu1  ;;  %v545_v33 = vadd.f32 %v531_v20, %v1888_v43 }
 0x2e1   :  { %v540_v27 = vadd.f32 %v462_v24, %v1885_v35 }
 0x2e2   :  { %v536_v26 = vmul.f32 0.5, %v535_v21 }
 0x2e3   :  { %v541_v28 = vmul.f32 0.5, %v540_v27 }
 0x2e4   :  { %1727 = vtanh.f32 %v536_v26 }
 0x2e5   :  { %1729 = vtanh.f32 %v541_v28 }
 0x2ee   :  { %v1728_v29 = vpop.eup %1727 }
 0x2ef   :  { %v538_v30 = vadd.f32 1.0, %v1728_v29  ;;  %v1730_v37 = vpop.eup %1729 }
 0x2f0   :  { %v543_v38 = vadd.f32 1.0, %v1730_v37 }
 0x2f1   :  { %v539_v31 = vmul.f32 0.5, %v538_v30 }
 0x2f2   :  { %v544_v40 = vmul.f32 0.5, %v543_v38 }
 0x2f3   :  { %v546_v34 = vmul.f32 %v545_v33, %v539_v31 }
 0x2f5   :  { %v547_v36 = vadd.f32 %v546_v34, %v1890_v44 }
 0x2f7   :  { %1731 = vtanh.f32 %v547_v36 }
 0x301   :  { %v1732_v39 = vpop.eup %1731 }
 0x302   :  { %v549_v41 = vsub.f32 %v390_v17, %v1732_v39 }
 0x304   :  { %v550_v42 = vmul.f32 %v549_v41, %v544_v40 }
 0x306   :  { %v551_v45 = vadd.f32 %v1732_v39, %v550_v42 }
 0x308   :  { %1458 = vmatmul.mubr.msk.f32.vlgmr.msra.gmra.mrb[4].mxu0 %vm229_vm3, %v551_v45  ;;  %1547 = vmatmul.mubr.msk.f32.vlgmr.msra.gmra.mrb[8].mxu1 %vm229_vm3, %v551_v45 }
 0x309   :  { %1649 = vmatpush1.bf16.msra.mxu0 %v1863_v13  ;;  %1656 = vmatpush3.bf16.msra.mxu1 %v1865_v14 }
 0x30a   :  { %1651 = vmatprep.subr.bf16.mxu0 %v1868_v18  ;;  %1657 = vmatprep.subr.bf16.mxu1 %v1816_v9 }
 0x30b   :  { %780 = vmatprep.mubr.f32.mxu0 %v1814_v0  ;;  %1557 = vmatprep.mubr.msk.f32.mxu1 %vm1815_vm1, %v1814_v0 }
 0x30d   :  { %1653 = vmatpush1.bf16.msra.mxu0 %v1872_v22  ;;  %1659 = vmatpush3.bf16.msra.mxu1 %v1874_v23 }
 0x30e   :  { %1661 = vmatprep.subr.bf16.mxu0 %v1860_v8  ;;  %1668 = vmatprep.subr.bf16.mxu1 %v1816_v9 }
 0x3db   :  { %v621_v46 = vpop.f32.mrb[4].mxu0  ;;  %v692_v47 = vpop.f32.mrb[8].mxu1 }
 0x3dc   :  { %v696_v48 = vadd.f32 %v621_v46, %v1882_v32  ;;  %v623_v49 = vpop.f32.mrb[5].mxu0  ;;  %v1548_v50 = vpop.f32.mrb[9].mxu1  ;;  %v706_v57 = vadd.f32 %v692_v47, %v1888_v43 }
 0x3dd   :  { %v701_v52 = vadd.f32 %v623_v49, %v1885_v35 }
 0x3de   :  { %v697_v51 = vmul.f32 0.5, %v696_v48 }
 0x3df   :  { %v702_v53 = vmul.f32 0.5, %v701_v52 }
 0x3e0   :  { %1733 = vtanh.f32 %v697_v51 }
 0x3e1   :  { %1735 = vtanh.f32 %v702_v53 }
 0x3ea   :  { %v1734_v54 = vpop.eup %1733 }
 0x3eb   :  { %v699_v55 = vadd.f32 1.0, %v1734_v54  ;;  %v1736_v60 = vpop.eup %1735 }
 0x3ec   :  { %v704_v61 = vadd.f32 1.0, %v1736_v60 }
 0x3ed   :  { %v700_v56 = vmul.f32 0.5, %v699_v55 }
 0x3ee   :  { %v705_v63 = vmul.f32 0.5, %v704_v61 }
 0x3ef   :  { %v707_v58 = vmul.f32 %v706_v57, %v700_v56 }
 0x3f1   :  { %v708_v59 = vadd.f32 %v707_v58, %v1890_v44 }
 0x3f3   :  { %1737 = vtanh.f32 %v708_v59 }
 0x3fd   :  { %v1738_v62 = vpop.eup %1737 }
 0x3fe   :  { %v710_v1 = vsub.f32 %v551_v45, %v1738_v62 }
 0x400   :  { %v711_v2 = vmul.f32 %v710_v1, %v705_v63 }
 0x402   :  { %v712_v3 = vadd.f32 %v1738_v62, %v711_v2 }
 0x404   :  { %1460 = vmatmul.mubr.msk.f32.vlgmr.msra.gmra.mrb[6].mxu0 %vm229_vm3, %v712_v3  ;;  %1558 = vmatmul.mubr.msk.f32.vlgmr.msra.gmra.mrb[10].mxu1 %vm229_vm3, %v712_v3 }
 0x405   :  { %1663 = vmatpush1.bf16.msra.mxu0 %v1863_v13  ;;  %1670 = vmatpush3.bf16.msra.mxu1 %v1865_v14 }
 0x406   :  { %1665 = vmatprep.subr.bf16.mxu0 %v1868_v18  ;;  %1671 = vmatprep.subr.bf16.mxu1 %v1816_v9 }
 0x407   :  { %941 = vmatprep.mubr.f32.mxu0 %v1814_v0  ;;  %1568 = vmatprep.mubr.msk.f32.mxu1 %vm1815_vm1, %v1814_v0 }
 0x409   :  { %1667 = vmatpush1.bf16.msra.mxu0 %v1872_v22  ;;  %1673 = vmatpush3.bf16.msra.mxu1 %v1874_v23 }
 0x40a   :  { %1675 = vmatprep.subr.bf16.mxu0 %v1860_v8  ;;  %1682 = vmatprep.subr.bf16.mxu1 %v1816_v9 }
 0x4d7   :  { %v782_v4 = vpop.f32.mrb[6].mxu0  ;;  %v853_v5 = vpop.f32.mrb[10].mxu1 }
 0x4d8   :  { %v857_v6 = vadd.f32 %v782_v4, %v1882_v32  ;;  %v784_v7 = vpop.f32.mrb[7].mxu0  ;;  %v1559_v10 = vpop.f32.mrb[11].mxu1  ;;  %v867_v20 = vadd.f32 %v853_v5, %v1888_v43 }
 0x4d9   :  { %v862_v12 = vadd.f32 %v784_v7, %v1885_v35 }
 0x4da   :  { %v858_v11 = vmul.f32 0.5, %v857_v6 }
 0x4db   :  { %v863_v15 = vmul.f32 0.5, %v862_v12  ;;  %v1358_v12 = vld [vmem:[#allocation3 + $0xa8] sm:$0xff] }
 0x4dc   :  { %1739 = vtanh.f32 %v858_v11  ;;  %v1357_v11 = vld [vmem:[#allocation3 + $0x90] sm:$0xff] }
 0x4dd   :  { %1741 = vtanh.f32 %v863_v15  ;;  %v1703_v15 = vpack.c.bf16 %v1358_v12, %v1357_v11 }
 0x4e6   :  { %v1740_v16 = vpop.eup %1739 }
 0x4e7   :  { %v860_v17 = vadd.f32 1.0, %v1740_v16  ;;  %v1742_v25 = vpop.eup %1741  ;;  %v1359_v16 = vld [vmem:[#allocation3 + $0xc0] sm:$0xff] }
 0x4e8   :  { %v865_v26 = vadd.f32 1.0, %v1742_v25 }
 0x4e9   :  { %v861_v19 = vmul.f32 0.5, %v860_v17  ;;  %v1360_v17 = vld [vmem:[#allocation3 + $0xd8] sm:$0xff] }
 0x4ea   :  { %v866_v28 = vmul.f32 0.5, %v865_v26 }
 0x4eb   :  { %v868_v21 = vmul.f32 %v867_v20, %v861_v19  ;;  %v1706_v19 = vpack.c.bf16 %v1360_v17, %v1359_v16 }
 0x4ed   :  { %v869_v24 = vadd.f32 %v868_v21, %v1890_v44 }
 0x4ef   :  { %1743 = vtanh.f32 %v869_v24 }
 0x4f9   :  { %v1744_v27 = vpop.eup %1743 }
 0x4fa   :  { %v871_v29 = vsub.f32 %v712_v3, %v1744_v27 }
 0x4fc   :  { %v872_v30 = vmul.f32 %v871_v29, %v866_v28 }
 0x4fe   :  { %v873_v31 = vadd.f32 %v1744_v27, %v872_v30 }
 0x500   :  { %1462 = vmatmul.mubr.msk.f32.vlgmr.msra.gmra.mrb[8].mxu0 %vm229_vm3, %v873_v31  ;;  %1569 = vmatmul.mubr.msk.f32.vlgmr.msra.gmra.mrb[12].mxu1 %vm229_vm3, %v873_v31 }
 0x501   :  { %1677 = vmatpush1.bf16.msra.mxu0 %v1863_v13  ;;  %1684 = vmatpush3.bf16.msra.mxu1 %v1865_v14 }
 0x502   :  { %1679 = vmatprep.subr.bf16.mxu0 %v1868_v18  ;;  %1685 = vmatprep.subr.bf16.mxu1 %v1816_v9 }
 0x503   :  { %1102 = vmatprep.mubr.f32.mxu0 %v1814_v0  ;;  %1579 = vmatprep.mubr.msk.f32.mxu1 %vm1815_vm1, %v1814_v0 }
 0x505   :  { %1681 = vmatpush1.bf16.msra.mxu0 %v1872_v22  ;;  %1687 = vmatpush3.bf16.msra.mxu1 %v1874_v23 }
 0x506   :  { %1689 = vmatprep.subr.bf16.mxu0 %v1860_v8  ;;  %1696 = vmatprep.subr.bf16.mxu1 %v1816_v9 }
 0x5d3   :  { %v943_v33 = vpop.f32.mrb[8].mxu0  ;;  %v1014_v34 = vpop.f32.mrb[12].mxu1 }
 0x5d4   :  { %v1018_v36 = vadd.f32 %v943_v33, %v1882_v32  ;;  %v945_v37 = vpop.f32.mrb[9].mxu0  ;;  %v1570_v38 = vpop.f32.mrb[13].mxu1  ;;  %v1028_v47 = vadd.f32 %v1014_v34, %v1888_v43 }
 0x5d5   :  { %v1023_v40 = vadd.f32 %v945_v37, %v1885_v35 }
 0x5d6   :  { %v1019_v39 = vmul.f32 0.5, %v1018_v36 }
 0x5d7   :  { %v1024_v41 = vmul.f32 0.5, %v1023_v40 }
 0x5d8   :  { %1745 = vtanh.f32 %v1019_v39 }
 0x5d9   :  { %1747 = vtanh.f32 %v1024_v41 }
 0x5e2   :  { %v1746_v42 = vpop.eup %1745 }
 0x5e3   :  { %v1021_v45 = vadd.f32 1.0, %v1746_v42  ;;  %v1748_v49 = vpop.eup %1747 }
 0x5e4   :  { %v1026_v50 = vadd.f32 1.0, %v1748_v49 }
 0x5e5   :  { %v1022_v46 = vmul.f32 0.5, %v1021_v45 }
 0x5e6   :  { %v1027_v52 = vmul.f32 0.5, %v1026_v50 }
 0x5e7   :  { %v1029_v8 = vmul.f32 %v1028_v47, %v1022_v46 }
 0x5e9   :  { %v1030_v48 = vadd.f32 %v1029_v8, %v1890_v44 }
 0x5eb   :  { %1749 = vtanh.f32 %v1030_v48 }
 0x5f5   :  { %v1750_v51 = vpop.eup %1749 }
 0x5f6   :  { %v1032_v53 = vsub.f32 %v873_v31, %v1750_v51 }
 0x5f8   :  { %v1033_v54 = vmul.f32 %v1032_v53, %v1027_v52 }
 0x5fa   :  { %v1034_v55 = vadd.f32 %v1750_v51, %v1033_v54 }
 0x5fc   :  { %1464 = vmatmul.mubr.msk.f32.vlgmr.msra.gmra.mrb[10].mxu0 %vm229_vm3, %v1034_v55  ;;  %1580 = vmatmul.mubr.msk.f32.vlgmr.msra.gmra.mrb[14].mxu1 %vm229_vm3, %v1034_v55 }
 0x5fd   :  { %1691 = vmatpush1.bf16.msra.mxu0 %v1863_v13  ;;  %1698 = vmatpush3.bf16.msra.mxu1 %v1865_v14 }
 0x5fe   :  { %1693 = vmatprep.subr.bf16.mxu0 %v1868_v18  ;;  %1699 = vmatprep.subr.bf16.mxu1 %v1816_v9 }
 0x5ff   :  { %1263 = vmatprep.mubr.f32.mxu0 %v1814_v0  ;;  %1590 = vmatprep.mubr.msk.f32.mxu1 %vm1815_vm1, %v1814_v0 }
 0x601   :  { %1695 = vmatpush1.bf16.msra.mxu0 %v1872_v22  ;;  %1701 = vmatpush3.bf16.msra.mxu1 %v1874_v23 }
 0x602   :  { %1702 = vmatprep.subr.bf16.mxu0 %v1816_v9 }
 0x6cf   :  { %v1104_v56 = vpop.f32.mrb[10].mxu0  ;;  %v1175_v57 = vpop.f32.mrb[14].mxu1 }
 0x6d0   :  { %v1179_v13 = vadd.f32 %v1104_v56, %v1882_v32  ;;  %v1106_v14 = vpop.f32.mrb[11].mxu0  ;;  %v1581_v58 = vpop.f32.mrb[15].mxu1  ;;  %v1189_v22 = vadd.f32 %v1175_v57, %v1888_v43 }
 0x6d1   :  { %v1184_v59 = vadd.f32 %v1106_v14, %v1885_v35 }
 0x6d2   :  { %v1180_v18 = vmul.f32 0.5, %v1179_v13 }
 0x6d3   :  { %v1185_v60 = vmul.f32 0.5, %v1184_v59 }
 0x6d4   :  { %1751 = vtanh.f32 %v1180_v18 }
 0x6d5   :  { %1753 = vtanh.f32 %v1185_v60 }
 0x6de   :  { %v1752_v61 = vpop.eup %1751 }
 0x6df   :  { %v1182_v62 = vadd.f32 1.0, %v1752_v61  ;;  %v1754_v2 = vpop.eup %1753 }
 0x6e0   :  { %v1187_v3 = vadd.f32 1.0, %v1754_v2 }
 0x6e1   :  { %v1183_v63 = vmul.f32 0.5, %v1182_v62 }
 0x6e2   :  { %v1188_v5 = vmul.f32 0.5, %v1187_v3 }
 0x6e3   :  { %v1190_v23 = vmul.f32 %v1189_v22, %v1183_v63 }
 0x6e5   :  { %v1191_v1 = vadd.f32 %v1190_v23, %v1890_v44 }
 0x6e7   :  { %1755 = vtanh.f32 %v1191_v1 }
 0x6f1   :  { %v1756_v4 = vpop.eup %1755 }
 0x6f2   :  { %v1193_v6 = vsub.f32 %v1034_v55, %v1756_v4 }
 0x6f4   :  { %v1194_v7 = vmul.f32 %v1193_v6, %v1188_v5 }
 0x6f6   :  { %v1195_v10 = vadd.f32 %v1756_v4, %v1194_v7 }
 0x6f8   :  { %1466 = vmatmul.mubr.msk.f32.vlgmr.msra.gmra.mrb[12].mxu0 %vm229_vm3, %v1195_v10  ;;  %1591 = vmatmul.mubr.msk.f32.vlgmr.msra.gmra.mrb[16].mxu1 %vm229_vm3, %v1195_v10 }
 0x6f9   :  { %1601 = vmatprep.mubr.msk.f32.mxu0 %vm1815_vm1, %v1814_v0  ;;  %1704 = vmatpush3.bf16.msra.mxu0 %v1703_v15 }
 0x6fa   :  { %1705 = vmatprep.subr.bf16.mxu0 %v1816_v9 }
 0x6fd   :  { %1707 = vmatpush3.bf16.msra.mxu0 %v1706_v19 }
 0x7cb   :  { %v1265_v20 = vpop.f32.mrb[12].mxu0  ;;  %v1336_v21 = vpop.f32.mrb[16].mxu1 }
 0x7cc   :  { %v1340_v24 = vadd.f32 %v1265_v20, %v1882_v32  ;;  %v1267_v25 = vpop.f32.mrb[13].mxu0  ;;  %v1592_v26 = vpop.f32.mrb[17].mxu1  ;;  %v1350_v9 = vadd.f32 %v1336_v21, %v1888_v43 }
 0x7cd   :  { %v1345_v0 = vadd.f32 %v1267_v25, %v1885_v35  ;;  %v1361_v35 = vld [vmem:[#allocation3 + $0x7a] ss:$0 sm:$0xff] }
 0x7ce   :  { %v1341_v27 = vmul.f32 0.5, %v1340_v24 }
 0x7cf   :  { %v1346_v28 = vmul.f32 0.5, %v1345_v0 }
 0x7d0   :  { %1757 = vtanh.f32 %v1341_v27 }
 0x7d1   :  { %1759 = vtanh.f32 %v1346_v28 }
 0x7da   :  { %v1758_v29 = vpop.eup %1757 }
 0x7db   :  { %v1343_v30 = vadd.f32 1.0, %v1758_v29  ;;  %v1760_v36 = vpop.eup %1759 }
 0x7dc   :  { %v1348_v37 = vadd.f32 1.0, %v1760_v36 }
 0x7dd   :  { %v1344_v31 = vmul.f32 0.5, %v1343_v30 }
 0x7de   :  { %v1349_v38 = vmul.f32 0.5, %v1348_v37 }
 0x7df   :  { %v1351_v33 = vmul.f32 %v1350_v9, %v1344_v31 }
 0x7e1   :  { %v1352_v34 = vadd.f32 %v1351_v33, %v1890_v44 }
 0x7e3   :  { %1761 = vtanh.f32 %v1352_v34 }
 0x7ed   :  { %v1762_v32 = vpop.eup %1761 }
 0x7ee   :  { %v1354_v39 = vsub.f32 %v1195_v10, %v1762_v32 }
 0x7f0   :  { %v1355_v40 = vmul.f32 %v1354_v39, %v1349_v38 }
 0x7f2   :  { %v1356_v41 = vadd.f32 %v1762_v32, %v1355_v40 }
 0x7f4   :  { %v1362_v42 = vmax.f32 %v1356_v41, 0.0 }
 0x7f6   :  { %1602 = vmatmul.mubr.msk.f32.vlgmr.msra.gmra.mrb[14].mxu0 %vm229_vm3, %v1362_v42 }
 0x8c9   :  { %v1432_v45 = vpop.f32.mrb[14].mxu0 }
 0x8ca   :  { %v1433_v43 = vadd.f32 %v1432_v45, %v1361_v35  ;;  %v1603_v46 = vpop.f32.mrb[15].mxu0 }
 0x8cc   :  { %1436 = vst [vmem:[#allocation6] sm:$0x1] %v1433_v43 }
 0x8cd   :  { %1796 = shalt.err (!%p1793_p13)
}
 0x8ce   :  { %s1797_s7 = scalar_lea.hbm %s2023_s3, 16 }
 0x8cf   :  { %p1798_p0 = scmp.ne.s32.totalorder %s2023_s3, %s1797_s7  ;;  %p1801_p1 = scmp.lt.u32.totalorder %s1797_s7, %s2023_s3 }
 0x8d1   :  { %p1803_p2 = pnand %p1801_p1, %p1798_p0 }
 0x8d3   :  { %1806 = shalt.err (!%p1803_p2)
}
 0x8d4   :  { %1446 = dma.vmem_to_hbm [thread:$0]  %s1444_s29, 16, %s2023_s3, [#allocation5]  }
 0x8d5   :  { %1809 = dma.done.wait [#allocation5], 16  }
 0x8d6   :  { %1810 = vsyncadd [#allocation5], 4294967280 }
 0x8d7   :  { %1450 = vsyncpa [#allocation4], 1 }
 0x8d8   :  { %1451 = vsyncpa [#allocation5], 1 }

</bundles_post_ra>
